<compile_context>
chip_gen: v7x
topology: tpu7x:2x2x1
jax: 0.10.0
libtpu: 0.0.40
codegen_flags: <defaults>
</compile_context>

<pallas_src>
import jax
import jax.numpy as jnp
from jax.experimental import pallas as pl
from jax.experimental.pallas import tpu as pltpu


def refine_kernel(x_ref, w1_ref, w1t_ref, b1_ref, w2s_ref, shift_ref,
                  out_ref, fc_ref):
    # x_ref:   (C, TN) pixel tile, pixels on the lane axis.
    # w1_ref:  (K, C); w1t_ref: (C, K); b1_ref: (K, 1)
    # w2s_ref: (C, C) BN-scale-folded conv2 weight; shift_ref: (C, 1)
    x = x_ref[...]

    # conv1 (1x1, bias): fc^T = W1 @ X + b1
    fc = jnp.dot(w1_ref[...], x, preferred_element_type=jnp.float32) + b1_ref[...]
    fc_ref[...] = fc.astype(fc_ref.dtype)

    # softmax(0.5 * fc) over the channel (sublane) axis, with the 1/sum
    # normalization DEFERRED past both linear layers:
    #   w2s @ relu(w1t @ (e*inv)) == (w2s @ relu(w1t @ e)) * inv
    # This identity holds only because inv > 0 (sum of exps); do not reuse it
    # for a masked softmax whose row sums can be zero.
    s = fc * 0.5
    s = s - jnp.max(s, axis=0, keepdims=True)
    e = jnp.exp(s)
    inv = pl.reciprocal(jnp.sum(e, axis=0, keepdims=True), approx=True)  # EUP

    # bmm(W1^T, e) per pixel, then ReLU (normalization applied after conv2).
    t = jnp.maximum(
        jnp.dot(w1t_ref[...], e, preferred_element_type=jnp.float32), 0.0)

    # conv2 (1x1, no bias) + BatchNorm: scale pre-folded into W2 rows, shift
    # added here; apply the deferred softmax normalization per pixel.
    y = (jnp.dot(w2s_ref[...], t, preferred_element_type=jnp.float32) * inv
         + shift_ref[...])

    # residual merge + ReLU
    # TODO(synk): for C < 8 these (C, TN) elementwise ops use only C of the 8
    # f32 sublanes per vreg; padding channels to 8 (extra HBM bytes) or a
    # (2C, TN/2) relayout would halve the VALU op count for this tail.
    out_ref[...] = jnp.maximum(0.5 * (y + x), 0.0).astype(out_ref.dtype)


def _cdiv(a, b):
    return -(-a // b)


def _round_up(a, b):
    return _cdiv(a, b) * b


def _default_vmem_budget_bytes():
    # ~48 MiB on v7x (64 MiB physical VMEM), ~96 MiB on v5e/v6e (128 MiB);
    # conservative fallback if the query is unavailable.
    try:
        phys = int(pltpu.get_tpu_info().vmem_capacity_bytes)
    except Exception:
        phys = 64 << 20
    return min(phys * 3 // 4, 100 << 20)


def refine_block_forward(x_nchw, params, *, tn=32768, vmem_budget_bytes=None,
                         fc_dtype=None, min_grid_programs=4):
    """x_nchw: (B, C, H, W) float32. Returns (refined (B,C,H,W), fc_out (B,K,H,W))."""
    w1 = params["w1"]          # (K, C)   conv1 weight (squeezed 1x1)
    b1 = params["b1"]          # (K,)
    w2 = params["w2"]          # (C, C)   conv2 weight (squeezed 1x1)
    gamma, beta = params["gamma"], params["beta"]
    mean, var, eps = params["mean"], params["var"], params["eps"]

    B, C, H, W = x_nchw.shape
    K = w1.shape[0]
    HW = H * W
    if vmem_budget_bytes is None:
        vmem_budget_bytes = _default_vmem_budget_bytes()
    if fc_dtype is None:
        # Pass jnp.bfloat16 here on bandwidth-limited parts (v5e): fc is the
        # largest HBM store stream (K = 2C in DeepLab's refine block).
        fc_dtype = x_nchw.dtype

    # NCHW is already channel-major per image: a pure reshape (no transpose,
    # no extra HBM pass) gives (B, C, H*W) with pixels on the lane axis.
    x = x_nchw.reshape(B, C, HW)

    # TODO(synk): PyTorch BatchNorm2d in training mode uses batch statistics;
    # here we fold eval-mode (running) statistics into a per-channel affine.
    scale = gamma / jnp.sqrt(var + eps)                 # (C,)
    shift = (beta - mean * scale).reshape(C, 1)         # (C, 1)
    w2s = w2 * scale[:, None]                           # fold BN scale into W2 rows
    w1t = jnp.transpose(w1)                             # (C, K)
    b1c = b1.reshape(K, 1)

    def tile_bytes(t):
        io = 2 * 4 * t * (2 * C + K)                    # double-buffered x/out/fc
        live = 4 * t * (3 * C + 2 * K + 1)              # in-kernel f32 temporaries
        wts = 2 * 4 * (2 * K * C + K + C * C + C)       # resident weight operands
        return io + live + wts

    # Lane-pad the pixel axis to a multiple of 128, then pick the largest tile
    # that (a) fits the VMEM budget and (b) leaves >= min_grid_programs grid
    # steps, so both v7x TensorCores get work and the pipeline can overlap.
    hw128 = _round_up(HW, 128)
    tn = max(128, min(_round_up(int(tn), 128), hw128))
    while tn > 128 and tile_bytes(tn) > vmem_budget_bytes:
        tn = max(128, _round_up(tn // 2, 128))
    while tn > 128 and B * _cdiv(hw128, tn) < min_grid_programs:
        tn = max(128, _round_up(tn // 2, 128))
    num_tiles = _cdiv(hw128, tn)
    tn = _round_up(_cdiv(hw128, num_tiles), 128)        # balance tiles, keep x128
    hw_pad = num_tiles * tn

    if hw_pad != HW:
        # Padded pixels run through the kernel harmlessly and are sliced off.
        x = jnp.pad(x, ((0, 0), (0, 0), (0, hw_pad - HW)))

    grid = (B, num_tiles)
    const = lambda b, j: (0, 0)

    # NOTE: if a v5e profile shows exposed DMA, pl.Buffered(3) on the x spec is
    # a cheap follow-up; default 2-deep buffering is kept here.
    out, fc = pl.pallas_call(
        refine_kernel,
        out_shape=(jax.ShapeDtypeStruct((B, C, hw_pad), x_nchw.dtype),
                   jax.ShapeDtypeStruct((B, K, hw_pad), fc_dtype)),
        grid_spec=pltpu.PrefetchScalarGridSpec(
            num_scalar_prefetch=0,
            grid=grid,
            in_specs=[
                pl.BlockSpec((None, C, tn), lambda b, j: (b, 0, j)),  # x tile (C, tn)
                pl.BlockSpec((K, C), const),                          # W1
                pl.BlockSpec((C, K), const),                          # W1^T
                pl.BlockSpec((K, 1), const),                          # b1
                pl.BlockSpec((C, C), const),                          # scale * W2
                pl.BlockSpec((C, 1), const),                          # BN shift
            ],
            out_specs=[
                pl.BlockSpec((None, C, tn), lambda b, j: (b, 0, j)),  # refined
                pl.BlockSpec((None, K, tn), lambda b, j: (b, 0, j)),  # fc_out
            ],
        ),
        compiler_params=pltpu.CompilerParams(
            dimension_semantics=("parallel", "parallel"),
            vmem_limit_bytes=int(min(max(tile_bytes(tn) + (16 << 20), 32 << 20),
                                     vmem_budget_bytes)),
        ),
    )(x, w1, w1t, b1c, w2s, shift)

    refined = out[:, :, :HW].reshape(B, C, H, W)
    fc_out = fc[:, :, :HW].reshape(B, K, H, W)
    return refined, fc_out


def reference_forward(x_nchw, params):
    """Pure-JAX reference mirroring the PyTorch forward (eval-mode BN)."""
    w1, b1, w2 = params["w1"], params["b1"], params["w2"]
    gamma, beta = params["gamma"], params["beta"]
    mean, var, eps = params["mean"], params["var"], params["eps"]
    B, C, H, W = x_nchw.shape
    K = w1.shape[0]

    x = jnp.transpose(x_nchw, (0, 2, 3, 1)).reshape(-1, C)
    fc = x @ w1.T + b1
    seg = jax.nn.softmax(fc * 0.5, axis=-1)
    r = jnp.maximum(seg @ w1, 0.0)
    y = r @ w2.T
    y = gamma * (y - mean) / jnp.sqrt(var + eps) + beta
    y = jnp.maximum(0.5 * (y + x), 0.0)
    refined = jnp.transpose(y.reshape(B, H, W, C), (0, 3, 1, 2))
    fc_out = jnp.transpose(fc.reshape(B, H, W, K), (0, 3, 1, 2))
    return refined, fc_out


def make_params(key, c, k):
    k1, k2, k3, k4, k5, k6, k7 = jax.random.split(key, 7)
    return {
        "w1": jax.random.normal(k1, (k, c), jnp.float32) * 0.5,    # conv1 weight
        "b1": jax.random.normal(k2, (k,), jnp.float32) * 0.1,      # conv1 bias
        "w2": jax.random.normal(k3, (c, c), jnp.float32) * 0.5,    # conv2[0] weight
        "gamma": 1.0 + 0.1 * jax.random.normal(k4, (c,), jnp.float32),
        "beta": 0.1 * jax.random.normal(k5, (c,), jnp.float32),
        "mean": 0.1 * jax.random.normal(k6, (c,), jnp.float32),
        "var": 1.0 + 0.1 * jax.random.uniform(k7, (c,), jnp.float32),
        "eps": 1e-5,
    }


if __name__ == "__main__":
    key = jax.random.PRNGKey(0)
    kx, kp = jax.random.split(key)

    B, C, H, W = 2, 4, 16, 16
    K = 8
    x = jax.random.normal(kx, (B, C, H, W), jnp.float32)
    params = make_params(kp, C, K)

    refined, fc_out = refine_block_forward(x, params)
    refined = jax.block_until_ready(refined)
    fc_out = jax.block_until_ready(fc_out)

    ref_refined, ref_fc = reference_forward(x, params)
    assert refined.shape == (B, C, H, W) and fc_out.shape == (B, K, H, W)
    # fc_out is exact matmul+bias; refined tolerance is relaxed because the
    # softmax denominator uses the EUP approximate reciprocal (~1e-4 rel err).
    assert jnp.allclose(fc_out, ref_fc, atol=1e-5, rtol=1e-5)
    assert jnp.allclose(refined, ref_refined, atol=5e-3, rtol=5e-3)

    print("KERNEL_OK")
</pallas_src>

<mosaic_0001>
module attributes {stable_mosaic.version = 11 : i64} {
  func.func @refine_kernel(%arg0: i32, %arg1: i32, %arg2: memref<1x4x128xf32, #tpu.memory_space<vmem>>, %arg3: memref<8x4xf32, #tpu.memory_space<vmem>>, %arg4: memref<4x8xf32, #tpu.memory_space<vmem>>, %arg5: memref<8x1xf32, #tpu.memory_space<vmem>>, %arg6: memref<4x4xf32, #tpu.memory_space<vmem>>, %arg7: memref<4x1xf32, #tpu.memory_space<vmem>>, %arg8: memref<1x4x128xf32, #tpu.memory_space<vmem>>, %arg9: memref<1x8x128xf32, #tpu.memory_space<vmem>>) attributes {dimension_semantics = [#tpu.dimension_semantics<parallel>, #tpu.dimension_semantics<parallel>], iteration_bounds = array<i64: 2, 2>, scalar_prefetch = 0 : i64, scratch_operands = 0 : i64, tpu.core_type = #tpu.core_type<tc>, window_params = [{transform_indices = @transform_0, window_bounds = array<i64: 1, 4, 128>}, {pipeline_mode = #tpu.pipeline_mode<synchronous>, transform_indices = @transform_1, window_bounds = array<i64: 8, 4>}, {pipeline_mode = #tpu.pipeline_mode<synchronous>, transform_indices = @transform_2, window_bounds = array<i64: 4, 8>}, {pipeline_mode = #tpu.pipeline_mode<synchronous>, transform_indices = @transform_3, window_bounds = array<i64: 8, 1>}, {pipeline_mode = #tpu.pipeline_mode<synchronous>, transform_indices = @transform_4, window_bounds = array<i64: 4, 4>}, {pipeline_mode = #tpu.pipeline_mode<synchronous>, transform_indices = @transform_5, window_bounds = array<i64: 4, 1>}, {transform_indices = @transform_6, window_bounds = array<i64: 1, 4, 128>}, {transform_indices = @transform_7, window_bounds = array<i64: 1, 8, 128>}]} {
    %c0 = arith.constant 0 : index
    %c0_0 = arith.constant 0 : index
    %c0_1 = arith.constant 0 : index
    %0 = vector.load %arg2[%c0, %c0_0, %c0_1] : memref<1x4x128xf32, #tpu.memory_space<vmem>>, vector<1x4x128xf32>
    %1 = vector.shape_cast %0 : vector<1x4x128xf32> to vector<4x128xf32>
    %c0_2 = arith.constant 0 : index
    %c0_3 = arith.constant 0 : index
    %2 = vector.load %arg3[%c0_2, %c0_3] : memref<8x4xf32, #tpu.memory_space<vmem>>, vector<8x4xf32>
    %cst = arith.constant dense<0.000000e+00> : vector<8x128xf32>
    %3 = tpu.matmul %2, %1, %cst {dimension_numbers = #tpu.dot_dimension_numbers<[1], [0], [0], [1], [0, 0, 1, 1], [], []>} : vector<8x4xf32>, vector<4x128xf32>, vector<8x128xf32> -> vector<8x128xf32>
    %c0_4 = arith.constant 0 : index
    %c0_5 = arith.constant 0 : index
    %4 = vector.load %arg5[%c0_4, %c0_5] : memref<8x1xf32, #tpu.memory_space<vmem>>, vector<8x1xf32>
    %5 = vector.broadcast %4 : vector<8x1xf32> to vector<8x128xf32>
    %6 = arith.addf %3, %5 : vector<8x128xf32>
    %c0_6 = arith.constant 0 : index
    %c0_7 = arith.constant 0 : index
    %c0_8 = arith.constant 0 : index
    %7 = vector.load %arg9[%c0_6, %c0_7, %c0_8] : memref<1x8x128xf32, #tpu.memory_space<vmem>>, vector<1x8x128xf32>
    %8 = vector.shape_cast %7 : vector<1x8x128xf32> to vector<8x128xf32>
    %9 = vector.shape_cast %6 : vector<8x128xf32> to vector<1x8x128xf32>
    tpu.vector_store %arg9[%c0_6, %c0_7, %c0_8], %9 {strides = array<i32>} : memref<1x8x128xf32, #tpu.memory_space<vmem>>, vector<1x8x128xf32>,
    %cst_9 = arith.constant 5.000000e-01 : f32
    %10 = vector.broadcast %cst_9 : f32 to vector<8x128xf32>
    %11 = arith.mulf %6, %10 : vector<8x128xf32>
    %cst_10 = arith.constant dense<0xFF800000> : vector<128xf32>
    %12 = vector.multi_reduction <maximumf>, %11, %cst_10 [0] : vector<8x128xf32> to vector<128xf32>
    %13 = vector.shape_cast %12 : vector<128xf32> to vector<1x128xf32>
    %14 = vector.broadcast %13 : vector<1x128xf32> to vector<8x128xf32>
    %15 = arith.subf %11, %14 : vector<8x128xf32>
    %16 = math.exp %15 : vector<8x128xf32>
    %cst_11 = arith.constant dense<0.000000e+00> : vector<128xf32>
    %17 = vector.multi_reduction <add>, %16, %cst_11 [0] : vector<8x128xf32> to vector<128xf32>
    %18 = vector.shape_cast %17 : vector<128xf32> to vector<1x128xf32>
    %19 = tpu.reciprocal %18 {approx = true} : vector<1x128xf32> -> vector<1x128xf32>
    %c0_12 = arith.constant 0 : index
    %c0_13 = arith.constant 0 : index
    %20 = vector.load %arg4[%c0_12, %c0_13] : memref<4x8xf32, #tpu.memory_space<vmem>>, vector<4x8xf32>
    %cst_14 = arith.constant dense<0.000000e+00> : vector<4x128xf32>
    %21 = tpu.matmul %20, %16, %cst_14 {dimension_numbers = #tpu.dot_dimension_numbers<[1], [0], [0], [1], [0, 0, 1, 1], [], []>} : vector<4x8xf32>, vector<8x128xf32>, vector<4x128xf32> -> vector<4x128xf32>
    %cst_15 = arith.constant 0.000000e+00 : f32
    %22 = vector.broadcast %cst_15 : f32 to vector<4x128xf32>
    %23 = arith.maximumf %21, %22 : vector<4x128xf32>
    %c0_16 = arith.constant 0 : index
    %c0_17 = arith.constant 0 : index
    %24 = vector.load %arg6[%c0_16, %c0_17] : memref<4x4xf32, #tpu.memory_space<vmem>>, vector<4x4xf32>
    %cst_18 = arith.constant dense<0.000000e+00> : vector<4x128xf32>
    %25 = tpu.matmul %24, %23, %cst_18 {dimension_numbers = #tpu.dot_dimension_numbers<[1], [0], [0], [1], [0, 0, 1, 1], [], []>} : vector<4x4xf32>, vector<4x128xf32>, vector<4x128xf32> -> vector<4x128xf32>
    %26 = vector.broadcast %19 : vector<1x128xf32> to vector<4x128xf32>
    %27 = arith.mulf %25, %26 : vector<4x128xf32>
    %c0_19 = arith.constant 0 : index
    %c0_20 = arith.constant 0 : index
    %28 = vector.load %arg7[%c0_19, %c0_20] : memref<4x1xf32, #tpu.memory_space<vmem>>, vector<4x1xf32>
    %29 = vector.broadcast %28 : vector<4x1xf32> to vector<4x128xf32>
    %30 = arith.addf %27, %29 : vector<4x128xf32>
    %31 = arith.addf %30, %1 : vector<4x128xf32>
    %cst_21 = arith.constant 5.000000e-01 : f32
    %32 = vector.broadcast %cst_21 : f32 to vector<4x128xf32>
    %33 = arith.mulf %32, %31 : vector<4x128xf32>
    %cst_22 = arith.constant 0.000000e+00 : f32
    %34 = vector.broadcast %cst_22 : f32 to vector<4x128xf32>
    %35 = arith.maximumf %33, %34 : vector<4x128xf32>
    %c0_23 = arith.constant 0 : index
    %c0_24 = arith.constant 0 : index
    %c0_25 = arith.constant 0 : index
    %36 = vector.load %arg8[%c0_23, %c0_24, %c0_25] : memref<1x4x128xf32, #tpu.memory_space<vmem>>, vector<1x4x128xf32>
    %37 = vector.shape_cast %36 : vector<1x4x128xf32> to vector<4x128xf32>
    %38 = vector.shape_cast %35 : vector<4x128xf32> to vector<1x4x128xf32>
    tpu.vector_store %arg8[%c0_23, %c0_24, %c0_25], %38 {strides = array<i32>} : memref<1x4x128xf32, #tpu.memory_space<vmem>>, vector<1x4x128xf32>,
    return
  }
  func.func @transform_0(%arg0: i32, %arg1: i32) -> (i32, i32, i32) {
    %c0_i32 = arith.constant 0 : i32
    %c0_i32_0 = arith.constant 0 : i32
    return %arg0, %c0_i32, %arg1 : i32, i32, i32
  }
  func.func @transform_1(%arg0: i32, %arg1: i32) -> (i32, i32) {
    %c0_i32 = arith.constant 0 : i32
    %c0_i32_0 = arith.constant 0 : i32
    %c0_i32_1 = arith.constant 0 : i32
    return %c0_i32, %c0_i32_0 : i32, i32
  }
  func.func @transform_2(%arg0: i32, %arg1: i32) -> (i32, i32) {
    %c0_i32 = arith.constant 0 : i32
    %c0_i32_0 = arith.constant 0 : i32
    %c0_i32_1 = arith.constant 0 : i32
    return %c0_i32, %c0_i32_0 : i32, i32
  }
  func.func @transform_3(%arg0: i32, %arg1: i32) -> (i32, i32) {
    %c0_i32 = arith.constant 0 : i32
    %c0_i32_0 = arith.constant 0 : i32
    %c0_i32_1 = arith.constant 0 : i32
    return %c0_i32, %c0_i32_0 : i32, i32
  }
  func.func @transform_4(%arg0: i32, %arg1: i32) -> (i32, i32) {
    %c0_i32 = arith.constant 0 : i32
    %c0_i32_0 = arith.constant 0 : i32
    %c0_i32_1 = arith.constant 0 : i32
    return %c0_i32, %c0_i32_0 : i32, i32
  }
  func.func @transform_5(%arg0: i32, %arg1: i32) -> (i32, i32) {
    %c0_i32 = arith.constant 0 : i32
    %c0_i32_0 = arith.constant 0 : i32
    %c0_i32_1 = arith.constant 0 : i32
    return %c0_i32, %c0_i32_0 : i32, i32
  }
  func.func @transform_6(%arg0: i32, %arg1: i32) -> (i32, i32, i32) {
    %c0_i32 = arith.constant 0 : i32
    %c0_i32_0 = arith.constant 0 : i32
    return %arg0, %c0_i32, %arg1 : i32, i32, i32
  }
  func.func @transform_7(%arg0: i32, %arg1: i32) -> (i32, i32, i32) {
    %c0_i32 = arith.constant 0 : i32
    %c0_i32_0 = arith.constant 0 : i32
    return %arg0, %c0_i32, %arg1 : i32, i32, i32
  }
}

</mosaic_0001>

<bundles_post_ra>
// kernel: tpu_custom_call.1
= control target key start
LH: loop header
LB: loop body
LE: loop exit
PB: predicated region body
PF: predicated region fallthrough
CT: control target
= control target key end

     0   :  { %s1227_s0 = inlined_call_operand.vmem [shape: f32[2,4,256], index: 0, kind: input, shape index: {}]   ;;  %s1228_s1 = inlined_call_operand.vmem [shape: f32[8,4], index: 1, kind: input, shape index: {}]   ;;  %s1229_s2 = inlined_call_operand.vmem [shape: f32[4,8], index: 2, kind: input, shape index: {}]   ;;  %s1230_s3 = inlined_call_operand.vmem [shape: f32[8,1], index: 3, kind: input, shape index: {}]   ;;  %s1231_s4 = inlined_call_operand.vmem [shape: f32[4,4], index: 4, kind: input, shape index: {}]   ;;  %s1232_s5 = inlined_call_operand.vmem [shape: f32[4,1], index: 5, kind: input, shape index: {}]   ;;  %s1233_s6 = inlined_call_operand.hbm [shape: f32[2,4,256], index: 6, kind: output, shape index: {0}]   ;;  %s1234_s7 = inlined_call_operand.hbm [shape: f32[2,8,256], index: 7, kind: output, shape index: {1}]  }
   0x1   :  { %1236 = sst [smem:[#allocation9_spill]] %s1227_s0 }
   0x2   :  { %1237 = sst [smem:[#allocation10_spill]] %s1230_s3 }
   0x3   :  { %13 = vsyncpa [#allocation3], 0 }
   0x4   :  { %15 = vsyncpa [#allocation3 + $0x1], 0 }
   0x5   :  { %16 = vsyncpa [#allocation5], 0 }
   0x6   :  { %18 = vsyncpa [#allocation5 + $0x1], 0  ;;  %s1032_s24 = smov 0   ;;  %s1034_s25 = smov 0  }
   0x7   :  { %s1036_s26 = smov 0   ;;  %s1038_s27 = smov 0  }
   0x8   :  { %s1040_s28 = smov 0   ;;  %s1042_s29 = smov 0  }
   0x9   :  { %s1044_s30 = smov 0   ;;  %s1046_s8 = smov 0  }
   0xa LB: > { %s732_s9 = sadd.s32 4294967295, %s985_s8   ;;  %s733_s10 = sadd.s32 4294967294, %s985_s8   ;;  %s985_s8 = sphi %s1046_s8, %s24_s8   ;;  %s981_s30 = sphi %s1044_s30, %s1250_s30   ;;  %s977_s29 = sphi %s1042_s29, %s1249_s29   ;;  %s973_s28 = sphi %s1040_s28, %s1248_s28   ;;  %s969_s27 = sphi %s1038_s27, %s1247_s27   ;;  %s965_s26 = sphi %s1036_s26, %s1246_s26   ;;  %s961_s25 = sphi %s1034_s25, %s1245_s25   ;;  %s957_s24 = sphi %s1032_s24, %s1244_s24  }
   0xb   : > { %s33_s11 = sadd.s32 1, %s977_s29  ;;  %s36_s12 = sadd.s32 1, %s981_s30 }
   0xc   : > { %p34_p0 = scmp.ge.s32.totalorder %s33_s11, 2  ;;  %p188_p1 = scmp.ne.s32.totalorder %s965_s26, %s961_s25 }
   0xd   : > { %p189_p2 = scmp.eq.s32.totalorder %s732_s9, 3  ;;  %p194_p5 = scmp.ne.s32.totalorder %s961_s25, %s957_s24 }
   0xe   : > { %s1252_s11 = smov (%p34_p0, %s33_s11), 0  ;;  %s1254_s12 = smov (!%p34_p0, %s36_s12), %s981_s30 }
   0xf   : > { %s174_s13 = ssub.s32 %s977_s29, %s1252_s11  ;;  %p1083_p3 = por %p189_p2, %p188_p1 }
  0x10   : > { %p38_p4 = scmp.ge.s32.totalorder %s1254_s12, 2  ;;  %p195_p6 = scmp.eq.s32.totalorder %s733_s10, 3 }
  0x11   : > { %p736_p7 = scmp.ge.s32.totalorder %s985_s8, 1  ;;  %p267_p9 = scmp.lt.s32.totalorder %s985_s8, 5 }
  0x12   : > { %s1256_s12 = smov (%p38_p4, %s1254_s12), 0  ;;  %p1092_p8 = por %p195_p6, %p194_p5 }
  0x13   : > { %1239 = sst [smem:[#allocation8_spill]] %s1256_s12  ;;  %s173_s16 = ssub.s32 %s981_s30, %s1256_s12 }
  0x14   : > { %s178_s17 = sadd.s32 1, %s965_s26  ;;  %s175_s18 = sor.u32 %s174_s13, %s173_s16 }
  0x15   : > { %p268_p10 = pnand %p736_p7, %p267_p9  ;;  %p176_p11 = scmp.eq.s32.totalorder %s175_s18, 0 }
  0x16   : > { %p307_p12 = scmp.lt.s32.totalorder (!%p268_p10), %s973_s28, 1  ;;  %p309_p13 = scmp.lt.s32.totalorder (!%p268_p10), %s969_s27, 1  ;;  %v987_v0 = vmov (!%p268_p10), 0.0   ;;  %vm988_vm0 = vmmov (!%p268_p10), 0   ;;  %v989_v2 = vmov (!%p268_p10), 0   ;;  %vm327_vm1 = vcmask (!%p268_p10), 1043456  }
  0x17   : > { %s1101_s19 = scalar_select %p176_p11, %s965_s26, %s178_s17  }
  0x18   : > { %271 = sbr.rel (%p268_p10) target bundleno = 734 (0x2de), region = 44  ;;  %760 = vmatprep.subr.mxu0 (!%p268_p10), %v987_v0  ;;  %762 = vmatprep.mubr.msk.f32.mxu0 (!%p268_p10), %vm988_vm0, %v987_v0  ;;  %s1241_s3 = sld [smem:[#allocation10_spill]] (!%p268_p10)  ;;  %v573_v3 = vld [vmem:[%s1232_s5] sm:$0xf] (!%p268_p10)  ;;  %vm323_vm2 = vcmask (!%p268_p10), 31744   ;;  %vm420_vm3 = vcmask (!%p268_p10), 64512  }
  0x19   : > { %854 = vset.pattern.permute.xlu0 (!%p268_p10), %v989_v2  ;;  %765 = vmatprep.subr.mxu1 (!%p268_p10), %v987_v0  ;;  %s1242_s0 = sld [smem:[#allocation9_spill]] (!%p268_p10)  ;;  %v316_v4 = vld [vmem:[%s1228_s1] sm:$0xff] (!%p268_p10)  ;;  %s990_s10 = smov (!%p268_p10), [#allocation4]  }
  0x1a   : > { %767 = vmatprep.mubr.msk.f32.mxu1 (!%p268_p10), %vm988_vm0, %v987_v0  ;;  %v419_v19 = vld [vmem:[%s1229_s2] sm:$0xf] (!%p268_p10)  ;;  %s863_s13 = sshll.u32 (!%p268_p10), %s990_s10, 4  ;;  %s864_s13 = int_to_ptr.vmem [resolvable:$false] %s863_s13 }
  0x1b   : > { %v495_v24 = vld [vmem:[%s1231_s4] sm:$0xf] (!%p268_p10) }
  0x1e   : > { %v317_v1 = vld [vmem:[%s1241_s3] sm:$0xff] (!%p268_p10) }
  0x1f   : > { %s308_s22 = scalar_select %p307_p12, %s973_s28, 1  ;;  %320 = vperm.xlu0 %854, %v317_v1  }
  0x20   : > { %s310_s23 = scalar_select %p309_p13, %s969_s27, 1 }
  0x21   : > { %s739_s9 = sshll.u32 %s308_s22, 1  ;;  %s1128_s22 = sand.u32 1, %s961_s25  }
  0x22   : > { %s312_s16 = sadd.s32 %s739_s9, %s310_s23  ;;  %s738_s23 = sshll.u32 %s1128_s22, 3 }
  0x23   : > { %s740_s17 = sshll.u32 %s312_s16, 2  ;;  %576 = vperm.xlu0 %854, %v573_v3   ;;  %s306_s3 = scalar_lea.vmem [#allocation4], %s738_s23 }
  0x24   : > { %s314_s21 = scalar_lea.vmem %s1242_s0, %s740_s17  ;;  %s748_s16 = sshll.u32 %s973_s28, 1 }
  0x25   : > { %v1121_v5 = vld [vmem:[%s314_s21] sm:$0xf]  ;;  %s1141_s17 = sadd.s32 %s969_s27, %s748_s16  ;;  %s620_s20 = sshll.u32 %s306_s3, 4  ;;  %s621_s20 = int_to_ptr.vmem [resolvable:$true] %s620_s20 }
  0x26   : > { %761 = vmatpush3.msk.msra.mxu0 %vm327_vm1, %v1121_v5  ;;  %s751_s18 = sshll.u32 %s1141_s17, 7  ;;  %s590_s9 = scalar_lea.sflag [#allocation5], %s1128_s22 }
  0x27   : > { %763 = vmatmul.mubr.msk.f32.vlgmr.msra.gmra.mrb[0].mxu0 %vm323_vm2, %v316_v4  ;;  %770 = vmatprep.subr.mxu0 %v987_v0  ;;  %s1147_s12 = scalar_lea.hbm %s1234_s7, %s751_s18  ;;  %s859_s0 = scalar_lea.vmem %s621_s20, 128 }
  0x28   : > { %772 = vmatprep.mubr.msk.f32.mxu0 %vm988_vm0, %v987_v0  ;;  %p860_p0 = scmp.ne.s32.totalorder %s621_s20, %s859_s0  ;;  %s865_s27 = scalar_lea.vmem %s864_s13, 256 }
  0x29   : > { %p866_p4 = scmp.lt.s32.totalorder %s621_s20, %s864_s13  ;;  %p867_p5 = scmp.lt.s32.totalorder %s865_s27, %s859_s0 }
  0x2a   : > { %p861_p1 = pnand %p860_p0, %p1083_p3 }
  0x2b   : > { %p868_p6 = por %p867_p5, %p866_p4 }
  0x2c   : > { %p862_p2 = pneg %p861_p1 }
  0x2e   : > { %p869_p7 = pnand %p868_p6, %p862_p2 }
  0x9e   : > { %v321_v6 = vpop.permute.xlu0 %320 }
  0xfa   : > { %v397_v7 = vpop.f32.mrb[0].mxu0 }
  0xfb   : > { %v398_v8 = vadd.f32 %v397_v7, %v321_v6  ;;  %v764_v9 = vpop.f32.mrb[1].mxu0 }
  0xfd   : > { %401 = vst [vmem:[%s306_s3] sm:$0xff] %v398_v8  ;;  %v402_v10 = vmul.f32 0.5, %v398_v8 }
  0xff   : > { %v403_v11 = vrot.slane %v402_v10, 4 }
 0x101   : > { %v404_v12 = vmax.f32 %v402_v10, %v403_v11 }
 0x103   : > { %v405_v13 = vrot.slane %v404_v12, 2 }
 0x105   : > { %v406_v14 = vmax.f32 %v404_v12, %v405_v13 }
 0x107   : > { %v407_v15 = vrot.slane %v406_v14, 1 }
 0x109   : > { %v408_v16 = vmax.f32 %v406_v14, %v407_v15 }
 0x10b   : > { %v409_v17 = vsub.f32 %v402_v10, %v408_v16 }
 0x10d   : > { %v410_v18 = vmul.f32 1.442695, %v409_v17 }
 0x10f   : > { %855 = vpow2.f32 %v410_v18 }
 0x119   : > { %v856_v20 = vpop.eup %855 }
 0x11a   : > { %766 = vmatpush3.msra.mxu1 %v856_v20 }
 0x11b   : > { %768 = vmatmul.mubr.msk.f32.vlgmr.msra.gmra.mrb[0].mxu1 %vm420_vm3, %v419_v19 }
 0x1ee   : > { %v490_v21 = vpop.f32.mrb[0].mxu1 }
 0x1ef   : > { %v494_v22 = vmax.f32 %v490_v21, 0.0  ;;  %v769_v23 = vpop.f32.mrb[1].mxu1 }
 0x1f1   : > { %771 = vmatpush3.msk.msra.mxu0 %vm327_vm1, %v494_v22 }
 0x1f2   : > { %773 = vmatmul.mubr.msk.f32.vlgmr.msra.gmra.mrb[2].mxu0 %vm323_vm2, %v495_v24 }
 0x1f3   : > { %872 = shalt.err (!%p869_p7)
}
 0x1f4   : > { %s873_s28 = scalar_lea.hbm %s1147_s12, 128  ;;  %s877_s18 = scalar_lea.hbm %s1234_s7, 512 }
 0x1f5   : > { %p874_p9 = scmp.ne.s32.totalorder %s1147_s12, %s873_s28  ;;  %p878_p12 = scmp.lt.u32.totalorder %s1147_s12, %s1234_s7 }
 0x1f6   : > { %p879_p13 = scmp.lt.u32.totalorder %s877_s18, %s873_s28  ;;  %p881_p1 = scmp.lt.u32.totalorder %s873_s28, %s1147_s12 }
 0x1f7   : > { %p875_p10 = pnand %p874_p9, %p1083_p3 }
 0x1f8   : > { %p880_p0 = por %p879_p13, %p878_p12 }
 0x1f9   : > { %p876_p11 = pneg %p875_p10 }
 0x1fa   : > { %p882_p2 = por %p881_p1, %p880_p0 }
 0x1fc   : > { %p883_p4 = pnand %p882_p2, %p876_p11 }
 0x1fe   : > { %886 = shalt.err (!%p883_p4)
}
 0x1ff   : > { %776 = dma.vmem_to_hbm [thread:$0]  (%p1083_p3), %s621_s20, 128, %s1147_s12, %s590_s9   ;;  %v412_v25 = vrot.slane %v856_v20, 4  ;;  %v577_v35 = vpop.permute.xlu0 %576 }
 0x200   : > { %s737_s0 = sshll.u32 %s1128_s22, 2  ;;  %s749_s20 = sshll.u32 %s1141_s17, 6 }
 0x201   : > { %v413_v26 = vadd.f32 %v856_v20, %v412_v25  ;;  %s299_s12 = scalar_lea.vmem [#allocation2], %s737_s0  ;;  %s1173_s27 = scalar_lea.hbm %s1233_s6, %s749_s20 }
 0x202   : > { %s605_s9 = sshll.u32 %s299_s12, 4  ;;  %s585_s28 = scalar_lea.sflag [#allocation3], %s1128_s22  ;;  %s1175_s9 = int_to_ptr.vmem [resolvable:$true] %s605_s9 }
 0x203   : > { %v414_v27 = vrot.slane %v413_v26, 2  ;;  %s887_s3 = scalar_lea.vmem %s1175_s9, 64  ;;  %s991_s17 = smov [#allocation2]  }
 0x204   : > { %p888_p5 = scmp.ne.s32.totalorder %s1175_s9, %s887_s3  ;;  %s891_s16 = sshll.u32 %s991_s17, 4  ;;  %s892_s16 = int_to_ptr.vmem [resolvable:$false] %s891_s16 }
 0x205   : > { %v415_v28 = vadd.f32 %v414_v27, %v413_v26  ;;  %s893_s18 = scalar_lea.vmem %s892_s16, 128  ;;  %p894_p9 = scmp.lt.s32.totalorder %s1175_s9, %s892_s16 }
 0x206   : > { %p889_p6 = pnand %p888_p5, %p1083_p3  ;;  %p895_p10 = scmp.lt.s32.totalorder %s893_s18, %s887_s3 }
 0x207   : > { %v416_v29 = vrot.slane %v415_v28, 1 }
 0x208   : > { %p890_p7 = pneg %p889_p6  ;;  %p896_p11 = por %p895_p10, %p894_p9 }
 0x209   : > { %v417_v30 = vadd.f32 %v416_v29, %v415_v28 }
 0x20a   : > { %p897_p12 = pnand %p896_p11, %p890_p7 }
 0x20b   : > { %857 = vrcp.f32 %v417_v30 }
 0x215   : > { %v858_v31 = vpop.eup %857 }
 0x2c5   : > { %v568_v32 = vpop.f32.mrb[2].mxu0 }
 0x2c6   : > { %v572_v33 = vmul.f32 %v858_v31, %v568_v32  ;;  %v774_v34 = vpop.f32.mrb[3].mxu0 }
 0x2c8   : > { %v579_v36 = vadd.f32 %v577_v35, %v572_v33 }
 0x2ca   : > { %v580_v37 = vadd.f32 %v579_v36, %v1121_v5 }
 0x2cc   : > { %v581_v38 = vmul.f32 0.5, %v580_v37 }
 0x2ce   : > { %v582_v39 = vmax.f32 %v581_v38, 0.0 }
 0x2d0   : > { %583 = vst [vmem:[%s299_s12] sm:$0xf] %v582_v39 }
 0x2d1   : > { %900 = shalt.err (!%p897_p12)
}
 0x2d2   : > { %s901_s22 = scalar_lea.hbm %s1173_s27, 64  ;;  %s905_s0 = scalar_lea.hbm %s1233_s6, 256 }
 0x2d3   : > { %p902_p13 = scmp.ne.s32.totalorder %s1173_s27, %s901_s22  ;;  %p906_p2 = scmp.lt.u32.totalorder %s1173_s27, %s1233_s6 }
 0x2d4   : > { %p907_p4 = scmp.lt.u32.totalorder %s905_s0, %s901_s22  ;;  %p909_p6 = scmp.lt.u32.totalorder %s901_s22, %s1173_s27 }
 0x2d5   : > { %p903_p0 = pnand %p902_p13, %p1083_p3 }
 0x2d6   : > { %p908_p5 = por %p907_p4, %p906_p2 }
 0x2d7   : > { %p904_p1 = pneg %p903_p0 }
 0x2d8   : > { %p910_p7 = por %p909_p6, %p908_p5 }
 0x2da   : > { %p911_p9 = pnand %p910_p7, %p904_p1 }
 0x2dc   : > { %914 = shalt.err (!%p911_p9)
}
 0x2dd   : > { %775 = dma.vmem_to_hbm [thread:$0]  (%p1083_p3), %s1175_s9, 64, %s1173_s27, %s585_s28  }
 0x2de PF: > { %p786_p10 = scmp.ge.s32.totalorder %s985_s8, 2  ;;  %s632_s10 = sand.u32 1, %s957_s24  }
 0x2df   : > { %s633_s13 = scalar_lea.sflag [#allocation3], %s632_s10 }
 0x2e0   : > { %p780_p11 = pnand %p786_p10, %p1092_p8 }
 0x2e2   : > { %948 = dma.done.wait (!%p780_p11), %s633_s13, 64  }
 0x2e3   : > { %950 = vsyncadd (!%p780_p11), %s633_s13, 4294967232  ;;  %s642_s3 = scalar_lea.sflag [#allocation5], %s632_s10 }
 0x2e4   : > { %952 = dma.done.wait (!%p780_p11), %s642_s3, 128  }
 0x2e5   : > { %954 = vsyncadd (!%p780_p11), %s642_s3, 4294967168  ;;  %s24_s8 = sadd.s32 1, %s985_s8   ;;  %s1243_s14 = sld [smem:[#allocation8_spill]] }
 0x2e6   : > { %p21_p12 = scmp.ge.s32.totalorder %s24_s8, 6   ;;  %s1244_s24 = smov %s961_s25 }
 0x2e7   : > { %s1245_s25 = smov %s965_s26  ;;  %s1246_s26 = smov %s1101_s19 }
 0x2e8   : > { %s1247_s27 = smov %s977_s29  ;;  %s1248_s28 = smov %s981_s30 }
 0x2e9   : > { %s1249_s29 = smov %s1252_s11  ;;  %23 = sbr.rel (!%p21_p12) target bundleno = 10 (0xa), region = 96 }
 0x2eb   : > { %s1250_s30 = smov %s1243_s14 }
 0x2f0   :  { %647 = vsyncpa [#allocation3], 1 }
 0x2f1   :  { %649 = vsyncpa [#allocation3 + $0x1], 1 }
 0x2f2   :  { %650 = vsyncpa [#allocation5], 1 }
 0x2f3   :  { %652 = vsyncpa [#allocation5 + $0x1], 1 }

</bundles_post_ra>
